<compile_context>
chip_gen: v7x
topology: tpu7x:2x2x1
jax: 0.10.0
libtpu: 0.0.40
codegen_flags: <defaults>
</compile_context>

<pallas_src>
import jax
import jax.numpy as jnp
from jax.experimental import pallas as pl
from jax.experimental.pallas import tpu as pltpu

IN_FEATURES = 3
HIDDEN = 64


def classifier_kernel(x_ref, w1_ref, b1_ref, w2_ref, b2_ref, o_ref):
    # x_ref : (TB, 3)   batch-major tile
    # w1_ref: (3, 64)   fc1 weight (in, out)
    # b1_ref: (1, 64)
    # w2_ref: (64, 1)
    # b2_ref: (1, 1)    scalar bias in SMEM
    # o_ref : (TB, 1)
    x = x_ref[...]

    # fc1 on the MXU: (TB,3) @ (3,64) -> (TB,64), f32 accumulation.
    h = jnp.dot(x, w1_ref[...],
                preferred_element_type=jnp.float32,
                precision=jax.lax.Precision.HIGHEST) + b1_ref[...]
    h = jnp.maximum(h, 0.0)                                  # ReLU (VPU)

    # fc2 on the MXU: (TB,64) @ (64,1) -> (TB,1).
    z = jnp.dot(h, w2_ref[...],
                preferred_element_type=jnp.float32,
                precision=jax.lax.Precision.HIGHEST) + b2_ref[0, 0]

    # Exact sigmoid (z is only (TB,1), cost is negligible).
    o_ref[...] = 1.0 / (1.0 + jnp.exp(-z))


def _round_up(n, m):
    return pl.cdiv(n, m) * m


def classifier_forward(x, w1, b1, w2, b2, *, tb=4096):
    """x: (B, 3); w1: (3, 64); b1: (64,); w2: (64, 1); b2: (1,)."""
    B = x.shape[0]
    hidden = w1.shape[1]

    # Batch tile: multiple of 8 (sublane alignment), clamped to the batch.
    b_ceil = _round_up(B, 8)
    tb = _round_up(min(max(tb, 8), b_ceil), 8)
    # v7x megacore: for non-trivial batches make sure the "parallel" axis has
    # at least 2 tiles so both TensorCores get work.
    if b_ceil >= 512 and b_ceil < 2 * tb:
        tb = _round_up(pl.cdiv(b_ceil, 2), 8)
    b_pad = _round_up(B, tb)
    n_tiles = b_pad // tb

    x = x.astype(jnp.float32)
    if b_pad != B:
        x = jnp.pad(x, ((0, b_pad - B), (0, 0)))            # padded rows stripped below

    w1f = w1.astype(jnp.float32)                             # (3, 64)
    b1r = b1.reshape(1, hidden).astype(jnp.float32)          # (1, 64)
    w2f = w2.reshape(hidden, 1).astype(jnp.float32)          # (64, 1)
    b2s = b2.reshape(1, 1).astype(jnp.float32)               # (1, 1) -> SMEM

    out = pl.pallas_call(
        classifier_kernel,
        out_shape=jax.ShapeDtypeStruct((b_pad, 1), jnp.float32),
        grid_spec=pltpu.PrefetchScalarGridSpec(
            num_scalar_prefetch=0,
            grid=(n_tiles,),
            in_specs=[
                pl.BlockSpec((tb, IN_FEATURES), lambda i: (i, 0)),   # x tile
                pl.BlockSpec((IN_FEATURES, hidden), lambda i: (0, 0)),
                pl.BlockSpec((1, hidden), lambda i: (0, 0)),
                pl.BlockSpec((hidden, 1), lambda i: (0, 0)),
                pl.BlockSpec(memory_space=pltpu.MemorySpace.SMEM),   # b2 scalar
            ],
            out_specs=pl.BlockSpec((tb, 1), lambda i: (i, 0)),
        ),
        compiler_params=pltpu.CompilerParams(
            dimension_semantics=("parallel",)),
    )(x, w1f, b1r, w2f, b2s)

    # Strip batch padding; result is already PyTorch-shaped (B, 1).
    return out[:B]


def classifier_reference(x, w1, b1, w2, b2):
    h = jnp.maximum(
        jnp.dot(x.astype(jnp.float32), w1,
                precision=jax.lax.Precision.HIGHEST) + b1, 0.0)
    z = jnp.dot(h, w2, precision=jax.lax.Precision.HIGHEST) + b2
    return 1.0 / (1.0 + jnp.exp(-z))


def init_params(key):
    # Mimic torch.nn.Linear init: uniform(-1/sqrt(fan_in), 1/sqrt(fan_in)).
    k1, k2, k3, k4 = jax.random.split(key, 4)
    lim1 = 1.0 / jnp.sqrt(3.0)
    lim2 = 1.0 / jnp.sqrt(64.0)
    w1 = jax.random.uniform(k1, (IN_FEATURES, HIDDEN), jnp.float32, -lim1, lim1)
    b1 = jax.random.uniform(k2, (HIDDEN,), jnp.float32, -lim1, lim1)
    w2 = jax.random.uniform(k3, (HIDDEN, 1), jnp.float32, -lim2, lim2)
    b2 = jax.random.uniform(k4, (1,), jnp.float32, -lim2, lim2)
    return w1, b1, w2, b2


if __name__ == "__main__":
    key = jax.random.PRNGKey(0)
    pkey, xkey, xkey2 = jax.random.split(key, 3)
    w1, b1, w2, b2 = init_params(pkey)

    # Small example batch: 8 "posterior" vectors of length 3.
    x = jax.random.uniform(xkey, (8, 3), jnp.float32)
    out = jax.block_until_ready(classifier_forward(x, w1, b1, w2, b2))
    ref = classifier_reference(x, w1, b1, w2, b2)
    assert out.shape == (8, 1)
    assert jnp.allclose(out, ref, atol=1e-4, rtol=1e-4), \
        float(jnp.max(jnp.abs(out - ref)))

    # Second check: non-multiple-of-8 batch with a multi-tile grid
    # (exercises padding, the batch-tiled pipeline and the parallel axis).
    x2 = jax.random.uniform(xkey2, (300, 3), jnp.float32)
    out2 = jax.block_until_ready(
        classifier_forward(x2, w1, b1, w2, b2, tb=128))
    ref2 = classifier_reference(x2, w1, b1, w2, b2)
    assert out2.shape == (300, 1)
    assert jnp.allclose(out2, ref2, atol=1e-4, rtol=1e-4), \
        float(jnp.max(jnp.abs(out2 - ref2)))

    print("KERNEL_OK")
</pallas_src>

<mosaic_0001>
module attributes {stable_mosaic.version = 11 : i64} {
  func.func @classifier_kernel(%arg0: i32, %arg1: memref<8x3xf32, #tpu.memory_space<vmem>>, %arg2: memref<3x64xf32, #tpu.memory_space<vmem>>, %arg3: memref<1x64xf32, #tpu.memory_space<vmem>>, %arg4: memref<64x1xf32, #tpu.memory_space<vmem>>, %arg5: memref<1x1xf32, #tpu.memory_space<smem>>, %arg6: memref<8x1xf32, #tpu.memory_space<vmem>>) attributes {dimension_semantics = [#tpu.dimension_semantics<parallel>], iteration_bounds = array<i64: 1>, scalar_prefetch = 0 : i64, scratch_operands = 0 : i64, tpu.core_type = #tpu.core_type<tc>, window_params = [{transform_indices = @transform_0, window_bounds = array<i64: 8, 3>}, {pipeline_mode = #tpu.pipeline_mode<synchronous>, transform_indices = @transform_1, window_bounds = array<i64: 3, 64>}, {pipeline_mode = #tpu.pipeline_mode<synchronous>, transform_indices = @transform_2, window_bounds = array<i64: 1, 64>}, {pipeline_mode = #tpu.pipeline_mode<synchronous>, transform_indices = @transform_3, window_bounds = array<i64: 64, 1>}, {transform_indices = @transform_4, window_bounds = array<i64: 1, 1>}, {transform_indices = @transform_5, window_bounds = array<i64: 8, 1>}]} {
    %c0 = arith.constant 0 : index
    %c0_0 = arith.constant 0 : index
    %0 = vector.load %arg1[%c0, %c0_0] : memref<8x3xf32, #tpu.memory_space<vmem>>, vector<8x3xf32>
    %c0_1 = arith.constant 0 : index
    %c0_2 = arith.constant 0 : index
    %1 = vector.load %arg2[%c0_1, %c0_2] : memref<3x64xf32, #tpu.memory_space<vmem>>, vector<3x64xf32>
    %cst = arith.constant dense<0.000000e+00> : vector<8x64xf32>
    %2 = tpu.matmul %0, %1, %cst {dimension_numbers = #tpu.dot_dimension_numbers<[1], [0], [0], [1], [0, 0, 1, 1], [], []>, precision = #tpu.contract_precision<fp32>} : vector<8x3xf32>, vector<3x64xf32>, vector<8x64xf32> -> vector<8x64xf32>
    %c0_3 = arith.constant 0 : index
    %c0_4 = arith.constant 0 : index
    %3 = vector.load %arg3[%c0_3, %c0_4] : memref<1x64xf32, #tpu.memory_space<vmem>>, vector<1x64xf32>
    %4 = vector.broadcast %3 : vector<1x64xf32> to vector<8x64xf32>
    %5 = arith.addf %2, %4 : vector<8x64xf32>
    %cst_5 = arith.constant 0.000000e+00 : f32
    %6 = vector.broadcast %cst_5 : f32 to vector<8x64xf32>
    %7 = arith.maximumf %5, %6 : vector<8x64xf32>
    %c0_6 = arith.constant 0 : index
    %c0_7 = arith.constant 0 : index
    %8 = vector.load %arg4[%c0_6, %c0_7] : memref<64x1xf32, #tpu.memory_space<vmem>>, vector<64x1xf32>
    %cst_8 = arith.constant dense<0.000000e+00> : vector<8x1xf32>
    %9 = tpu.matmul %7, %8, %cst_8 {dimension_numbers = #tpu.dot_dimension_numbers<[1], [0], [0], [1], [0, 0, 1, 1], [], []>, precision = #tpu.contract_precision<fp32>} : vector<8x64xf32>, vector<64x1xf32>, vector<8x1xf32> -> vector<8x1xf32>
    %c0_9 = arith.constant 0 : index
    %c0_10 = arith.constant 0 : index
    %10 = memref.load %arg5[%c0_9, %c0_10] : memref<1x1xf32, #tpu.memory_space<smem>>
    %11 = vector.broadcast %10 : f32 to vector<8x1xf32>
    %12 = arith.addf %9, %11 : vector<8x1xf32>
    %cst_11 = arith.constant 0.000000e+00 : f32
    %13 = vector.broadcast %cst_11 : f32 to vector<8x1xf32>
    %14 = arith.subf %13, %12 : vector<8x1xf32>
    %15 = math.exp %14 : vector<8x1xf32>
    %cst_12 = arith.constant 1.000000e+00 : f32
    %16 = vector.broadcast %cst_12 : f32 to vector<8x1xf32>
    %17 = arith.addf %16, %15 : vector<8x1xf32>
    %cst_13 = arith.constant 1.000000e+00 : f32
    %18 = vector.broadcast %cst_13 : f32 to vector<8x1xf32>
    %19 = arith.divf %18, %17 : vector<8x1xf32>
    %c0_14 = arith.constant 0 : index
    %c0_15 = arith.constant 0 : index
    %20 = vector.load %arg6[%c0_14, %c0_15] : memref<8x1xf32, #tpu.memory_space<vmem>>, vector<8x1xf32>
    tpu.vector_store %arg6[%c0_14, %c0_15], %19 {strides = array<i32>} : memref<8x1xf32, #tpu.memory_space<vmem>>, vector<8x1xf32>,
    return
  }
  func.func @transform_0(%arg0: i32) -> (i32, i32) {
    %c0_i32 = arith.constant 0 : i32
    %c0_i32_0 = arith.constant 0 : i32
    return %arg0, %c0_i32 : i32, i32
  }
  func.func @transform_1(%arg0: i32) -> (i32, i32) {
    %c0_i32 = arith.constant 0 : i32
    %c0_i32_0 = arith.constant 0 : i32
    %c0_i32_1 = arith.constant 0 : i32
    return %c0_i32, %c0_i32_0 : i32, i32
  }
  func.func @transform_2(%arg0: i32) -> (i32, i32) {
    %c0_i32 = arith.constant 0 : i32
    %c0_i32_0 = arith.constant 0 : i32
    %c0_i32_1 = arith.constant 0 : i32
    return %c0_i32, %c0_i32_0 : i32, i32
  }
  func.func @transform_3(%arg0: i32) -> (i32, i32) {
    %c0_i32 = arith.constant 0 : i32
    %c0_i32_0 = arith.constant 0 : i32
    %c0_i32_1 = arith.constant 0 : i32
    return %c0_i32, %c0_i32_0 : i32, i32
  }
  func.func @transform_4(%arg0: i32) -> (i32, i32) {
    %c0_i32 = arith.constant 0 : i32
    %c0_i32_0 = arith.constant 0 : i32
    %c0_i32_1 = arith.constant 0 : i32
    return %c0_i32, %c0_i32_0 : i32, i32
  }
  func.func @transform_5(%arg0: i32) -> (i32, i32) {
    %c0_i32 = arith.constant 0 : i32
    %c0_i32_0 = arith.constant 0 : i32
    return %arg0, %c0_i32 : i32, i32
  }
}

</mosaic_0001>

<bundles_post_ra>
// kernel: tpu_custom_call.1
= control target key start
LH: loop header
LB: loop body
LE: loop exit
PB: predicated region body
PF: predicated region fallthrough
CT: control target
= control target key end

     0   :  { %vm34_vm0 = vcmask 1042432   ;;  %vm30_vm1 = vcmask 23552   ;;  %v1359_v0 = vmov 0.0   ;;  %vm1360_vm2 = vmmov 0   ;;  %s1533_s1 = inlined_call_operand.vmem [shape: f32[3,64], index: 1, kind: input, shape index: {}]   ;;  %s1534_s0 = inlined_call_operand.vmem [shape: f32[8,3], index: 0, kind: input, shape index: {}]   ;;  %s1535_s3 = inlined_call_operand.vmem [shape: f32[64,1], index: 3, kind: input, shape index: {}]   ;;  %s1536_s2 = inlined_call_operand.vmem [shape: f32[1,64], index: 2, kind: input, shape index: {}]   ;;  %s1537_s4 = inlined_call_operand.<no memory space> [shape: f32[1,1], index: 4, kind: input, shape index: {}]   ;;  %s1538_s5 = inlined_call_operand.vmem [shape: f32[8,1], index: 5, kind: output, shape index: {}]  }
   0x1   :  { %1115 = vmatprep.subr.mxu0 %v1359_v0  ;;  %v22_v1 = vld [vmem:[%s1533_s1] sm:$0x7]  ;;  %1117 = vmatprep.mubr.msk.f32.mxu0 %vm1360_vm2, %v1359_v0  ;;  %v1361_v6 = vmov 0.0|0.0   ;;  %v486_v7 = vld [vmem:[%s1535_s3 + $0x8] sm:$0xff]  ;;  %v1411_v9 = vld [vmem:[%s1535_s3 + $0x10] sm:$0xff]  ;;  %vm495_vm3 = vcmask 523264  }
   0x2   :  { %v21_v2 = vld [vmem:[%s1534_s0] sm:$0xff]  ;;  %v36_v4 = vsel %vm34_vm0, %v22_v1, 0  ;;  %1283 = vmatprep.subr.bf16.mxu1 %v1361_v6  ;;  %v1416_v10 = vld [vmem:[%s1535_s3 + $0x18] sm:$0xff]  ;;  %1199 = vmatprep.mubr.msk.f32.mxu1 %vm1360_vm2, %v1359_v0  ;;  %v503_v13 = vand.u32 4294901760, %v486_v7  ;;  %v506_v14 = vand.u32 4294901760, %v1411_v9  ;;  %v490_v31 = vld [vmem:[%s1535_s3 + $0x28] sm:$0xff] }
   0x3   :  { %v485_v3 = vld [vmem:[%s1535_s3] sm:$0xff]  ;;  %v32_v5 = vsel %vm30_vm1, %v21_v2, 0  ;;  %v39_v11 = vand.u32 4294901760, %v36_v4  ;;  %v509_v16 = vand.u32 4294901760, %v1416_v10  ;;  %v515_v33 = vand.u32 4294901760, %v490_v31  ;;  %v491_v37 = vld [vmem:[%s1535_s3 + $0x30] sm:$0xff] }
   0x4   :  { %v500_v8 = vand.u32 4294901760, %v485_v3  ;;  %v104_v12 = vand.u32 4294901760, %v32_v5  ;;  %v1424_v19 = vsub.f32 %v486_v7, %v503_v13  ;;  %v1427_v20 = vsub.f32 %v1411_v9, %v506_v14  ;;  %v489_v30 = vld [vmem:[%s1535_s3 + $0x20] sm:$0xff]  ;;  %v492_v38 = vld [vmem:[%s1535_s3 + $0x38] sm:$0xff] }
   0x5   :  { %1116 = vmatpush3.msra.mxu0 %v39_v11  ;;  %v116_v17 = vsub.f32 %v36_v4, %v39_v11  ;;  %v1431_v21 = vsub.f32 %v1416_v10, %v509_v16  ;;  %v512_v32 = vand.u32 4294901760, %v489_v30  ;;  %v619_v36 = vsub.f32 %v490_v31, %v515_v33  ;;  %v1048_v1 = vld [vmem:[%s1536_s2] ss:$0 sm:$0xff] }
   0x6   :  { %v1421_v15 = vsub.f32 %v485_v3, %v500_v8  ;;  %v105_v18 = vsub.f32 %v32_v5, %v104_v12  ;;  %1120 = vmatprep.subr.mxu0 %v1359_v0  ;;  %v1462_v34 = vpack.c.bf16 %v503_v13, %v500_v8  ;;  %v518_v40 = vand.u32 4294901760, %v491_v37 }
   0x7   :  { %v117_v23 = vand.u32 4294901760, %v116_v17  ;;  %v1287_v27 = vpack.c.bf16 %v1431_v21, %v1427_v20  ;;  %v612_v35 = vsub.f32 %v489_v30, %v512_v32  ;;  %v521_v41 = vand.u32 4294901760, %v492_v38 }
   0x8   :  { %v106_v22 = vand.u32 4294901760, %v105_v18  ;;  %v1284_v24 = vpack.c.bf16 %v1424_v19, %v1421_v15  ;;  %v1472_v42 = vpack.c.bf16 %v509_v16, %v506_v14  ;;  %v626_v43 = vsub.f32 %v491_v37, %v518_v40 }
   0x9   :  { %v118_v26 = vsub.f32 %v116_v17, %v117_v23  ;;  %v1290_v39 = vpack.c.bf16 %v619_v36, %v612_v35  ;;  %v633_v44 = vsub.f32 %v492_v38, %v521_v41  ;;  %v1477_v46 = vpack.c.bf16 %v515_v33, %v512_v32 }
   0xa   :  { %v107_v25 = vsub.f32 %v105_v18, %v106_v22  ;;  %1285 = vmatpush3.bf16.msra.mxu1 %v1284_v24  ;;  %v1482_v47 = vpack.c.bf16 %v521_v41, %v518_v40  ;;  %v613_v48 = vand.u32 4294901760, %v612_v35  ;;  %v620_v49 = vand.u32 4294901760, %v619_v36 }
   0xb   :  { %1286 = vmatprep.subr.bf16.mxu1 %v1361_v6  ;;  %v119_v29 = vand.u32 4294901760, %v118_v26  ;;  %v1293_v45 = vpack.c.bf16 %v633_v44, %v626_v43  ;;  %v627_v54 = vand.u32 4294901760, %v626_v43  ;;  %v634_v55 = vand.u32 4294901760, %v633_v44 }
   0xc   :  { %v108_v28 = vand.u32 4294901760, %v107_v25  ;;  %v614_v50 = vsub.f32 %v612_v35, %v613_v48  ;;  %v621_v51 = vsub.f32 %v619_v36, %v620_v49  ;;  %v1314_v62 = vpack.c.bf16 %v620_v49, %v613_v48 }
   0xd   :  { %v628_v57 = vsub.f32 %v626_v43, %v627_v54  ;;  %v635_v58 = vsub.f32 %v633_v44, %v634_v55  ;;  %v1317_v63 = vpack.c.bf16 %v634_v55, %v627_v54  ;;  %v585_v2 = vand.u32 4294901760, %v1421_v15 }
   0xe   :  { %1118 = vmatmul.mubr.f32.vlgmr.msra.gmra.mrb[0].mxu0 %v108_v28  ;;  %1288 = vmatpush3.bf16.msra.mxu1 %v1287_v27  ;;  %v615_v52 = vand.u32 4294901760, %v614_v50  ;;  %v622_v53 = vand.u32 4294901760, %v621_v51  ;;  %v592_v4 = vand.u32 4294901760, %v1424_v19  ;;  %v606_v13 = vand.u32 4294901760, %v1431_v21 }
   0xf   :  { %1121 = vmatpush3.msra.mxu0 %v119_v29  ;;  %1122 = vmatprep.mubr.msk.f32.mxu0 %vm1360_vm2, %v1359_v0  ;;  %v629_v59 = vand.u32 4294901760, %v628_v57  ;;  %v636_v60 = vand.u32 4294901760, %v635_v58  ;;  %v586_v9 = vsub.f32 %v1421_v15, %v585_v2  ;;  %v494_v31 = vstv %s1537_s4 }
  0x10   :  { %1125 = vmatprep.subr.mxu0 %v1359_v0  ;;  %1289 = vmatprep.subr.bf16.mxu1 %v1361_v6  ;;  %v1278_v56 = vpack.c.bf16 %v622_v53, %v615_v52  ;;  %vm1042_vm4 = vcmask 7168  }
  0x11   :  { %v1281_v61 = vpack.c.bf16 %v636_v60, %v629_v59 }
  0x12   :  { %1291 = vmatpush3.bf16.msra.mxu1 %v1290_v39 }
  0x13   :  { %1292 = vmatprep.subr.bf16.mxu1 %v1361_v6 }
  0x16   :  { %1123 = vmatmul.mubr.f32.vlgmr.msra.gmra.mrb[0].mxu0 %v104_v12  ;;  %1294 = vmatpush3.bf16.msra.mxu1 %v1293_v45 }
  0x17   :  { %1126 = vmatpush3.msra.mxu0 %v116_v17  ;;  %1127 = vmatprep.mubr.msk.f32.mxu0 %vm1360_vm2, %v1359_v0  ;;  %v587_v17 = vand.u32 4294901760, %v586_v9 }
  0x18   :  { %1130 = vmatprep.subr.mxu0 %v1359_v0  ;;  %1295 = vmatprep.subr.bf16.mxu1 %v1361_v6 }
  0x1e   :  { %1128 = vmatmul.mubr.f32.vlgmr.msra.gmra.mrb[0].mxu0 %v105_v18 }
  0x1f   :  { %1131 = vmatpush3.msra.mxu0 %v39_v11  ;;  %1132 = vmatprep.mubr.msk.f32.mxu0 %vm1360_vm2, %v1359_v0 }
  0x20   :  { %1135 = vmatprep.subr.mxu0 %v1359_v0 }
  0x26   :  { %1133 = vmatmul.mubr.f32.vlgmr.msra.gmra.mrb[0].mxu0 %v106_v22 }
  0x27   :  { %1136 = vmatpush3.msra.mxu0 %v117_v23  ;;  %1137 = vmatprep.mubr.msk.f32.mxu0 %vm1360_vm2, %v1359_v0  ;;  %v607_v23 = vsub.f32 %v1431_v21, %v606_v13  ;;  %v1308_v21 = vpack.c.bf16 %v592_v4, %v585_v2 }
  0x28   :  { %1140 = vmatprep.subr.mxu0 %v1359_v0 }
  0x29   :  { %v608_v26 = vand.u32 4294901760, %v607_v23 }
  0x2e   :  { %1138 = vmatmul.mubr.f32.vlgmr.msra.gmra.mrb[0].mxu0 %v104_v12 }
  0x2f   :  { %1141 = vmatpush3.msra.mxu0 %v39_v11  ;;  %1142 = vmatprep.mubr.msk.f32.mxu0 %vm1360_vm2, %v1359_v0  ;;  %v593_v11 = vsub.f32 %v1424_v19, %v592_v4 }
  0x30   :  { %1259 = vmatprep.subr.bf16.mxu0 %v1361_v6 }
  0x31   :  { %v594_v18 = vand.u32 4294901760, %v593_v11 }
  0x33   :  { %v1272_v19 = vpack.c.bf16 %v594_v18, %v587_v17 }
  0x36   :  { %1143 = vmatmul.mubr.f32.vlgmr.msra.gmra.mrb[0].mxu0 %v104_v12  ;;  %v599_v12 = vand.u32 4294901760, %v1427_v20 }
  0x37   :  { %1161 = vmatprep.mubr.msk.f32.mxu0 %vm1360_vm2, %v1359_v0  ;;  %1261 = vmatpush3.bf16.msra.mxu0 %v1462_v34 }
  0x38   :  { %1262 = vmatprep.subr.bf16.mxu0 %v1361_v6  ;;  %v600_v22 = vsub.f32 %v1427_v20, %v599_v12  ;;  %v1311_v28 = vpack.c.bf16 %v606_v13, %v599_v12 }
  0x3a   :  { %v601_v25 = vand.u32 4294901760, %v600_v22 }
  0x3b   :  { %1264 = vmatpush3.bf16.msra.mxu0 %v1472_v42 }
  0x3c   :  { %1265 = vmatprep.subr.bf16.mxu0 %v1361_v6  ;;  %v1275_v20 = vpack.c.bf16 %v608_v26, %v601_v25 }
  0x3f   :  { %1267 = vmatpush3.bf16.msra.mxu0 %v1477_v46 }
  0x40   :  { %1268 = vmatprep.subr.bf16.mxu0 %v1361_v6 }
  0x43   :  { %1270 = vmatpush3.bf16.msra.mxu0 %v1482_v47 }
  0x44   :  { %1271 = vmatprep.subr.bf16.mxu0 %v1361_v6 }
 0x109   :  { %v480_v3 = vpop.f32.mrb[0].mxu0 }
 0x10a   :  { %v1331_v5 = vadd.f32 %v1048_v1, %v480_v3  ;;  %v1144_v7 = vpop.f32.mrb[1].mxu0 }
 0x10c   :  { %v484_v8 = vmax.f32 %v1331_v5, 0.0 }
 0x10e   :  { %v497_v10 = vsel %vm495_vm3, %v484_v8, 0 }
 0x10f   :  { %v572_v14 = vand.u32 4294901760, %v497_v10 }
 0x111   :  { %v573_v16 = vsub.f32 %v497_v10, %v572_v14 }
 0x113   :  { %v574_v24 = vand.u32 4294901760, %v573_v16  ;;  %1200 = vmatmul.mubr.f32.vlgmr.msra.gmra.mrb[0].mxu1 %v573_v16 }
 0x114   :  { %1297 = vmatpush3.bf16.msra.mxu1 %v1462_v34  ;;  %1218 = vmatprep.mubr.msk.f32.mxu1 %vm1360_vm2, %v1359_v0 }
 0x115   :  { %1298 = vmatprep.subr.bf16.mxu1 %v1361_v6  ;;  %v575_v15 = vsub.f32 %v573_v16, %v574_v24 }
 0x117   :  { %v576_v27 = vand.u32 4294901760, %v575_v15 }
 0x118   :  { %1300 = vmatpush3.bf16.msra.mxu1 %v1472_v42 }
 0x119   :  { %1162 = vmatmul.mubr.f32.vlgmr.msra.gmra.mrb[2].mxu0 %v576_v27  ;;  %1301 = vmatprep.subr.bf16.mxu1 %v1361_v6 }
 0x11a   :  { %1273 = vmatpush3.bf16.msra.mxu0 %v1272_v19  ;;  %1180 = vmatprep.mubr.msk.f32.mxu0 %vm1360_vm2, %v1359_v0 }
 0x11b   :  { %1274 = vmatprep.subr.bf16.mxu0 %v1361_v6 }
 0x11c   :  { %1303 = vmatpush3.bf16.msra.mxu1 %v1477_v46 }
 0x11d   :  { %1304 = vmatprep.subr.bf16.mxu1 %v1361_v6 }
 0x11e   :  { %1276 = vmatpush3.bf16.msra.mxu0 %v1275_v20 }
 0x11f   :  { %1277 = vmatprep.subr.bf16.mxu0 %v1361_v6 }
 0x120   :  { %1306 = vmatpush3.bf16.msra.mxu1 %v1482_v47 }
 0x121   :  { %1307 = vmatprep.subr.bf16.mxu1 %v1361_v6 }
 0x122   :  { %1279 = vmatpush3.bf16.msra.mxu0 %v1278_v56 }
 0x123   :  { %1219 = vmatmul.mubr.f32.vlgmr.msra.gmra.mrb[0].mxu1 %v574_v24  ;;  %1280 = vmatprep.subr.bf16.mxu0 %v1361_v6 }
 0x124   :  { %1309 = vmatpush3.bf16.msra.mxu1 %v1308_v21  ;;  %1237 = vmatprep.mubr.msk.f32.mxu1 %vm1360_vm2, %v1359_v0 }
 0x125   :  { %1310 = vmatprep.subr.bf16.mxu1 %v1361_v6 }
 0x126   :  { %1282 = vmatpush3.bf16.msra.mxu0 %v1281_v61 }
 0x128   :  { %1312 = vmatpush3.bf16.msra.mxu1 %v1311_v28 }
 0x129   :  { %1181 = vmatmul.mubr.f32.vlgmr.msra.gmra.mrb[2].mxu0 %v572_v14  ;;  %1313 = vmatprep.subr.bf16.mxu1 %v1361_v6 }
 0x12c   :  { %1315 = vmatpush3.bf16.msra.mxu1 %v1314_v62 }
 0x12d   :  { %1316 = vmatprep.subr.bf16.mxu1 %v1361_v6 }
 0x130   :  { %1318 = vmatpush3.bf16.msra.mxu1 %v1317_v63 }
 0x131   :  { %1319 = vmatprep.subr.bf16.mxu1 %v1361_v6 }
 0x133   :  { %1238 = vmatmul.mubr.f32.vlgmr.msra.gmra.mrb[0].mxu1 %v572_v14 }
 0x134   :  { %1321 = vmatpush3.bf16.msra.mxu1 %v1462_v34  ;;  %1256 = vmatprep.mubr.msk.f32.mxu1 %vm1360_vm2, %v1359_v0 }
 0x135   :  { %1322 = vmatprep.subr.bf16.mxu1 %v1361_v6 }
 0x138   :  { %1324 = vmatpush3.bf16.msra.mxu1 %v1472_v42 }
 0x139   :  { %1325 = vmatprep.subr.bf16.mxu1 %v1361_v6 }
 0x13c   :  { %1327 = vmatpush3.bf16.msra.mxu1 %v1477_v46 }
 0x13d   :  { %1328 = vmatprep.subr.bf16.mxu1 %v1361_v6 }
 0x140   :  { %1330 = vmatpush3.bf16.msra.mxu1 %v1482_v47 }
 0x143   :  { %1257 = vmatmul.mubr.f32.vlgmr.msra.gmra.mrb[0].mxu1 %v572_v14 }
 0x1fc   :  { %v689_v29 = vpop.f32.mrb[2].mxu0 }
 0x1fd   :  { %v1182_v30 = vpop.f32.mrb[3].mxu0  ;;  %v1332_v0 = vadd.f32 %v689_v29, %v494_v31 }
 0x216   :  { %v1032_v32 = vpop.f32.mrb[0].mxu1 }
 0x217   :  { %v1333_v33 = vadd.f32 %v1332_v0, %v1032_v32  ;;  %v1258_v34 = vpop.f32.mrb[1].mxu1 }
 0x219   :  { %v1036_v35 = vsub.f32 0.0, %v1333_v33 }
 0x21b   :  { %v1037_v36 = vmul.f32 1.442695, %v1036_v35 }
 0x21d   :  { %1355 = vpow2.f32 %v1037_v36 }
 0x227   :  { %v1356_v37 = vpop.eup %1355 }
 0x228   :  { %v1039_v38 = vadd.f32 1.0, %v1356_v37 }
 0x22a   :  { %1357 = vrcp.f32 %v1039_v38 }
 0x234   :  { %v1358_v6 = vpop.eup %1357 }
 0x235   :  { %1043 = vst.msk [vmem:[%s1538_s5] sm:$0xff] %vm1042_vm4, %v1358_v6 }

</bundles_post_ra>
